<compile_context>
chip_gen: v7x
topology: tpu7x:2x2x1
jax: 0.10.0
libtpu: 0.0.40
codegen_flags: <defaults>
</compile_context>

<pallas_src>
from functools import partial

import jax
import jax.numpy as jnp
from jax.experimental import pallas as pl
from jax.experimental.pallas import tpu as pltpu


def _copy_kernel(x_ref, o_ref):
    # Pure pass-through of the current lane-dense tile.
    o_ref[...] = x_ref[...]


_LANE_CANDIDATES = (2048, 1024, 512, 256, 128)
_TARGET_TILE_BYTES = 4 * 1024 * 1024  # ~4 MiB tiles: amortize per-step
                                      # overhead; 4x tile (double-buffered
                                      # in+out) fits v7x's 64 MiB VMEM.


@jax.jit
def dummy_forward(x: jax.Array) -> jax.Array:
    """Identity forward, matching Dummy.forward(input) -> input."""
    orig_shape = x.shape
    dtype = x.dtype
    n = x.size
    if n == 0:
        return x

    itemsize = jnp.dtype(dtype).itemsize

    flat = x.reshape(-1)
    # Rarely needed: pad so the flat length is a multiple of 128 lanes.
    pad = (-n) % 128
    if pad:
        flat = jnp.concatenate([flat, jnp.zeros((pad,), dtype=dtype)])
    total = n + pad

    # Lane-dense 2-D slab: (rows, lane) with lane a large multiple of 128.
    lane = next(w for w in _LANE_CANDIDATES if total % w == 0)
    rows = total // lane
    x2 = flat.reshape(rows, lane)

    # Sublane multiple for packed dtypes (f32: 8, bf16: 16, int8/fp8: 32).
    sub = max(8, 32 // itemsize)
    target_rows = max(sub, (_TARGET_TILE_BYTES // (lane * itemsize)) // sub * sub)
    if rows <= target_rows:
        tm = rows           # block == full dim -> always layout-legal
    else:
        tm = target_rows    # multiple of `sub`; ragged tail block is masked

    out2 = pl.pallas_call(
        _copy_kernel,
        out_shape=jax.ShapeDtypeStruct((rows, lane), dtype),
        grid=(pl.cdiv(rows, tm),),
        in_specs=[pl.BlockSpec((tm, lane), lambda i: (i, 0))],
        out_specs=pl.BlockSpec((tm, lane), lambda i: (i, 0)),
        input_output_aliases={0: 0},
        compiler_params=pltpu.CompilerParams(
            dimension_semantics=("parallel",),
        ),
    )(x2)

    out = out2.reshape(-1)
    if pad:
        out = out[:n]
    return out.reshape(orig_shape)


if __name__ == "__main__":
    key = jax.random.PRNGKey(0)
    # Small NCHW input consistent with typical module usage.
    x = jax.random.normal(key, (2, 4, 16, 16), dtype=jnp.float32)

    y = dummy_forward(x)
    jax.block_until_ready(y)

    # Verify identity semantics exactly.
    assert y.shape == x.shape
    assert y.dtype == x.dtype
    assert bool(jnp.all(y == x))

    print("KERNEL_OK")
</pallas_src>

<mosaic_0001>
module attributes {stable_mosaic.version = 11 : i64} {
  func.func @_copy_kernel(%arg0: i32, %arg1: memref<1x2048xf32, #tpu.memory_space<vmem>>, %arg2: memref<1x2048xf32, #tpu.memory_space<vmem>>) attributes {dimension_semantics = [#tpu.dimension_semantics<parallel>], iteration_bounds = array<i64: 1>, scalar_prefetch = 0 : i64, scratch_operands = 0 : i64, tpu.core_type = #tpu.core_type<tc>, window_params = [{transform_indices = @transform_0, window_bounds = array<i64: 1, 2048>}, {transform_indices = @transform_1, window_bounds = array<i64: 1, 2048>}]} {
    %c0 = arith.constant 0 : index
    %c0_0 = arith.constant 0 : index
    %0 = vector.load %arg1[%c0, %c0_0] : memref<1x2048xf32, #tpu.memory_space<vmem>>, vector<1x2048xf32>
    %c0_1 = arith.constant 0 : index
    %c0_2 = arith.constant 0 : index
    %1 = vector.load %arg2[%c0_1, %c0_2] : memref<1x2048xf32, #tpu.memory_space<vmem>>, vector<1x2048xf32>
    tpu.vector_store %arg2[%c0_1, %c0_2], %0 {strides = array<i32>} : memref<1x2048xf32, #tpu.memory_space<vmem>>, vector<1x2048xf32>,
    return
  }
  func.func @transform_0(%arg0: i32) -> (i32, i32) {
    %c0_i32 = arith.constant 0 : i32
    %c0_i32_0 = arith.constant 0 : i32
    return %arg0, %c0_i32 : i32, i32
  }
  func.func @transform_1(%arg0: i32) -> (i32, i32) {
    %c0_i32 = arith.constant 0 : i32
    %c0_i32_0 = arith.constant 0 : i32
    return %arg0, %c0_i32 : i32, i32
  }
}

</mosaic_0001>

<bundles_post_ra>
// kernel: dummy_forward.1
= control target key start
LH: loop header
LB: loop body
LE: loop exit
PB: predicated region body
PF: predicated region fallthrough
CT: control target
= control target key end

     0   :  { %s38_s0 = inlined_call_operand.vmem [shape: f32[1,2048], index: 0, kind: input, shape index: {}, may-alias: {0,1}]   ;;  %s39_s1 = inlined_call_operand.vmem [shape: f32[1,2048], index: 1, kind: output, shape index: {}, may-alias: {0,1}]  }
   0x1   :  { %v8_v0 = vld [vmem:[%s38_s0] sm:$0xff]  ;;  %v9_v1 = vld [vmem:[%s38_s0 + $0x8] sm:$0xff] }
   0x2   :  { %10 = vst [vmem:[%s39_s1] sm:$0xff] %v8_v0  ;;  %11 = vst [vmem:[%s39_s1 + $0x8] sm:$0xff] %v9_v1 }

</bundles_post_ra>
